<compile_context>
chip_gen: v7x
topology: tpu7x:2x2x1
jax: 0.10.0
libtpu: 0.0.40
codegen_flags: <defaults>
</compile_context>

<pallas_src>
import math

import jax
import jax.numpy as jnp
import numpy as np
from jax.experimental import pallas as pl
from jax.experimental.pallas import tpu as pltpu


def _round_up(x, m):
    return ((x + m - 1) // m) * m


def _blkdiag(a, b):
    """[[a, 0], [0, b]] for 2-D arrays."""
    ra, ca = a.shape
    rb, cb = b.shape
    top = jnp.concatenate([a, jnp.zeros((ra, cb), a.dtype)], axis=1)
    bot = jnp.concatenate([jnp.zeros((rb, ca), b.dtype), b], axis=1)
    return jnp.concatenate([top, bot], axis=0)


def _lowrank_kernel(hf_ref, ht_ref, wf_ref, wt_ref, b1_ref,
                    wl_ref, bl_ref, wr_ref, br_ref, fold_ref, o_ref):
    # First Linear + ReLU for both edge orderings of both edges of the pair:
    # h = [h0_e0 | h1_e0 | h0_e1 | h1_e1]   (tp, 4H)
    h = jnp.maximum(
        jnp.dot(hf_ref[...], wf_ref[...], preferred_element_type=jnp.float32)
        + jnp.dot(ht_ref[...], wt_ref[...], preferred_element_type=jnp.float32)
        + b1_ref[...], 0.0)
    # Second Linear fused with the low-rank selections (w2@el etc. precomputed):
    # l = [l0_e0 | l1_e0 | l0_e1 | l1_e1], r likewise   (tp, 4*R*A*A)
    l = jnp.dot(h, wl_ref[...], preferred_element_type=jnp.float32) + bl_ref[...]
    r = jnp.dot(h, wr_ref[...], preferred_element_type=jnp.float32) + br_ref[...]
    # Rank/ordering fold (0.5 mean baked in) -> lane-dense (tp, 2*A*A) output.
    o_ref[...] = jnp.dot(l * r, fold_ref[...], preferred_element_type=jnp.float32)


def _fullrank_kernel(hf_ref, ht_ref, wf_ref, wt_ref, b1_ref,
                     wo_ref, bo_ref, o_ref):
    h = jnp.maximum(
        jnp.dot(hf_ref[...], wf_ref[...], preferred_element_type=jnp.float32)
        + jnp.dot(ht_ref[...], wt_ref[...], preferred_element_type=jnp.float32)
        + b1_ref[...], 0.0)
    # Second Linear with the ordering mean + transpose permutation folded in
    # -> lane-dense (tp, 2*A*A) output, no epilogue.
    o_ref[...] = (jnp.dot(h, wo_ref[...], preferred_element_type=jnp.float32)
                  + bo_ref[...])


def dcg_payoff_forward(hidden_states_n, edges_from, edges_to, params, *,
                       dim_act, payoff_rank, low_rank_payoff=True, tp=None):
    """Pallas implementation of DCG_payoff.forward.

    hidden_states_n: (B, n_agents, F) float32
    edges_from/to:   (E,) int32
    params: (w1 (2F,H), b1 (1,H), w2 (H,P), b2 (1,P))
    returns (B, E, dim_act, dim_act) float32
    """
    w1, b1, w2, b2 = params
    B, _, F = hidden_states_n.shape
    E = edges_from.shape[0]
    H = w1.shape[1]
    P = w2.shape[1]
    A = dim_act
    AA = A * A
    N = B * E

    f32 = jnp.float32
    w1 = w1.astype(f32)
    b1 = b1.astype(f32)
    w2 = w2.astype(f32)
    b2 = b2.astype(f32)

    def _wspec(shape):
        return pl.BlockSpec(shape, lambda i: (0, 0))

    # --- ordering fusion of the first Linear --------------------------------
    # [h_to, h_from] @ w1 == [h_from, h_to] @ w1s with w1s the half-row swap.
    w1s = jnp.concatenate([w1[F:], w1[:F]], axis=0)
    w1c = jnp.concatenate([w1, w1s], axis=1)               # (2F, 2H): h = [h0|h1]
    b1c = jnp.concatenate([b1, b1], axis=1)                 # (1, 2H)
    # Split top/bottom halves so hf/ht feed separately (no XLA concat copy);
    # block-diag once more because two edges are packed per row.
    wf = _blkdiag(w1c[:F], w1c[:F])                          # (2F, 4H)
    wt = _blkdiag(w1c[F:], w1c[F:])                          # (2F, 4H)
    b1p = jnp.concatenate([b1c, b1c], axis=1)                # (1, 4H)

    # --- edge gather (XLA) ---------------------------------------------------
    # TODO(synk): fuse this gather in-kernel (scalar-prefetch edge ids + DMA of
    # the whole hidden_states_n, which is tiny) instead of the XLA gather.
    hf = hidden_states_n[:, edges_from].astype(f32).reshape(N, F)
    ht = hidden_states_n[:, edges_to].astype(f32).reshape(N, F)

    # --- tile sizing ---------------------------------------------------------
    lr_width = 4 * payoff_rank * AA if low_rank_payoff else 2 * AA
    # rough per-pair-row VMEM bytes: double-buffered in/out + intermediates
    row_bytes = ((2 * F) * 2 + 2 * AA) * 4 * 2 + (4 * H + 3 * lr_width) * 4
    n_pairs = pl.cdiv(N, 2)
    if tp is None:
        tp = min(1024, _round_up(n_pairs, 8))
        # keep a few grid steps so v7x's two TensorCores both get work
        while tp > 128 and pl.cdiv(n_pairs, tp) < 4:
            tp //= 2
        # cap the working set (~40 MiB) so double buffering survives 64 MiB VMEM (v7x)
        while tp > 128 and tp * row_bytes > 40 * (1 << 20):
            tp //= 2
    tp = max(8, _round_up(tp, 8))

    np_pad = _round_up(n_pairs, tp)                          # padded pair-rows
    n_pad = 2 * np_pad
    if n_pad != N:
        pad = ((0, n_pad - N), (0, 0))
        hf = jnp.pad(hf, pad)
        ht = jnp.pad(ht, pad)
    hf = hf.reshape(np_pad, 2 * F)                           # row j = [edge 2j | edge 2j+1]
    ht = ht.reshape(np_pad, 2 * F)
    grid = (np_pad // tp,)

    # --- branch-specific fused weights --------------------------------------
    if low_rank_payoff:
        R = payoff_rank
        assert P == 2 * R * A, \
            "w2 output dim must equal 2*payoff_rank*dim_act for low-rank payoff"
        el = np.zeros((P, R * AA), np.float32)
        er = np.zeros((P, R * AA), np.float32)
        elt = np.zeros((P, R * AA), np.float32)
        ert = np.zeros((P, R * AA), np.float32)
        for r in range(R):
            for a in range(A):
                for b in range(A):
                    col = r * AA + a * A + b
                    el[r * 2 * A + a, col] = 1.0        # left_r[a]
                    er[r * 2 * A + A + b, col] = 1.0    # right_r[b]
                    elt[r * 2 * A + A + a, col] = 1.0   # right_r[a] (transposed ordering)
                    ert[r * 2 * A + b, col] = 1.0       # left_r[b]  (transposed ordering)
        el, er, elt, ert = map(jnp.asarray, (el, er, elt, ert))

        wl1 = _blkdiag(w2 @ el, w2 @ elt)                # (2H, 2*R*AA), orderings fused
        wr1 = _blkdiag(w2 @ er, w2 @ ert)
        bl1 = jnp.concatenate([b2 @ el, b2 @ elt], axis=1)
        br1 = jnp.concatenate([b2 @ er, b2 @ ert], axis=1)
        wl = _blkdiag(wl1, wl1)                          # (4H, 4*R*AA), two edges/row
        wr = _blkdiag(wr1, wr1)
        bl = jnp.concatenate([bl1, bl1], axis=1)
        br = jnp.concatenate([br1, br1], axis=1)
        fold1 = jnp.asarray(0.5 * np.tile(np.eye(AA, dtype=np.float32), (2 * R, 1)))
        fold = _blkdiag(fold1, fold1)                    # (4*R*AA, 2*AA), 0.5 baked in

        kernel = _lowrank_kernel
        extra = (wl, bl, wr, br, fold)
    else:
        assert P == AA, \
            "w2 output dim must equal dim_act**2 when low_rank_payoff=False"
        tperm = np.zeros((AA, AA), np.float32)
        for a in range(A):
            for b in range(A):
                tperm[b * A + a, a * A + b] = 1.0
        tperm = jnp.asarray(tperm)
        wo1 = jnp.concatenate([0.5 * w2, 0.5 * (w2 @ tperm)], axis=0)   # (2H, AA)
        bo1 = 0.5 * (b2 + b2 @ tperm)                                    # (1, AA)
        wo = _blkdiag(wo1, wo1)                                          # (4H, 2*AA)
        bo = jnp.concatenate([bo1, bo1], axis=1)                         # (1, 2*AA)

        kernel = _fullrank_kernel
        extra = (wo, bo)

    args = (hf, ht, wf, wt, b1p) + extra
    weights_bytes = sum(int(np.prod(a.shape)) * 4 for a in (wf, wt, b1p) + extra)
    vmem_limit = int(min(64 * (1 << 20),
                         max(32 * (1 << 20),
                             weights_bytes + tp * row_bytes + (8 << 20))))

    in_specs = [
        pl.BlockSpec((tp, 2 * F), lambda i: (i, 0)),     # hf pair tile
        pl.BlockSpec((tp, 2 * F), lambda i: (i, 0)),     # ht pair tile
        _wspec(wf.shape), _wspec(wt.shape), _wspec(b1p.shape),
    ] + [_wspec(a.shape) for a in extra]

    out = pl.pallas_call(
        kernel,
        out_shape=jax.ShapeDtypeStruct((np_pad, 2 * AA), jnp.float32),
        grid_spec=pltpu.PrefetchScalarGridSpec(
            num_scalar_prefetch=0,
            grid=grid,
            in_specs=in_specs,
            out_specs=pl.BlockSpec((tp, 2 * AA), lambda i: (i, 0)),
        ),
        compiler_params=pltpu.CompilerParams(
            dimension_semantics=("parallel",),
            vmem_limit_bytes=vmem_limit),
    )(*args)

    # (np_pad, 2*AA) -> (n_pad, AA) is a free row-major view; drop padding rows.
    # TODO(synk): optional bf16 input/weight path (keep preferred_element_type=f32).
    return out.reshape(n_pad, AA)[:N].reshape(B, E, A, A)


def _reference_forward(hidden_states_n, edges_from, edges_to, params, *,
                       dim_act, payoff_rank, low_rank_payoff=True):
    """Pure-JAX replication of the PyTorch forward for validation."""
    w1, b1, w2, b2 = params
    hf = hidden_states_n[:, edges_from]
    ht = hidden_states_n[:, edges_to]
    x = jnp.stack([jnp.concatenate([hf, ht], axis=-1),
                   jnp.concatenate([ht, hf], axis=-1)], axis=0)   # (2, B, E, 2F)
    h = jnp.maximum(x @ w1 + b1[0], 0.0)
    p = h @ w2 + b2[0]                                            # (2, B, E, P)
    dim = p.shape[:-1]
    A = dim_act
    if low_rank_payoff:
        p = p.reshape(int(math.prod(dim)) * payoff_rank, 2, A)
        pay = p[:, 0, :, None] * p[:, 1, None, :]
        pay = pay.reshape(dim + (payoff_rank, A, A)).sum(axis=-3)
    else:
        pay = p.reshape(dim + (A, A))
    pay = pay.at[1].set(jnp.swapaxes(pay[1], -1, -2))
    return pay.mean(axis=0)


if __name__ == "__main__":
    # Module config (synthetic, deterministic)
    B = 2            # batch
    n_agents = 6
    F = 16           # per-agent feature size -> dim_input = 2*F = 32
    dim_input = 2 * F
    dim_hidden = 32
    dim_act = 8
    payoff_rank = 2

    key = jax.random.PRNGKey(0)
    k1, k2, k3, k4, k5, k6, k7 = jax.random.split(key, 7)

    # Deterministic "PyTorch-Linear-like" init (uniform +-1/sqrt(fan_in))
    lim1 = 1.0 / math.sqrt(dim_input)
    lim2 = 1.0 / math.sqrt(dim_hidden)
    w1 = jax.random.uniform(k1, (dim_input, dim_hidden), jnp.float32, -lim1, lim1)
    b1 = jax.random.uniform(k2, (1, dim_hidden), jnp.float32, -lim1, lim1)

    hidden_states = jax.random.normal(k5, (B, n_agents, F), jnp.float32)
    # Fully-connected-ish edge list (E = 8 edges) -> N = B*E = 16 rows
    edges_from = jnp.array([0, 0, 1, 1, 2, 3, 4, 5], dtype=jnp.int32)
    edges_to   = jnp.array([1, 2, 3, 5, 4, 0, 5, 2], dtype=jnp.int32)

    # ---- low-rank payoff path ----
    P_low = 2 * payoff_rank * dim_act
    w2 = jax.random.uniform(k3, (dim_hidden, P_low), jnp.float32, -lim2, lim2)
    b2 = jax.random.uniform(k4, (1, P_low), jnp.float32, -lim2, lim2)
    params = (w1, b1, w2, b2)

    out = dcg_payoff_forward(hidden_states, edges_from, edges_to, params,
                             dim_act=dim_act, payoff_rank=payoff_rank,
                             low_rank_payoff=True)
    out = jax.block_until_ready(out)
    ref = _reference_forward(hidden_states, edges_from, edges_to, params,
                             dim_act=dim_act, payoff_rank=payoff_rank,
                             low_rank_payoff=True)
    assert out.shape == (B, edges_from.shape[0], dim_act, dim_act)
    assert jnp.allclose(out, ref, atol=2e-5, rtol=2e-5), "low-rank mismatch vs reference"

    # ---- full-rank payoff path ----
    P_full = dim_act ** 2
    w2f = jax.random.uniform(k6, (dim_hidden, P_full), jnp.float32, -lim2, lim2)
    b2f = jax.random.uniform(k7, (1, P_full), jnp.float32, -lim2, lim2)
    params_f = (w1, b1, w2f, b2f)
    out_f = dcg_payoff_forward(hidden_states, edges_from, edges_to, params_f,
                               dim_act=dim_act, payoff_rank=payoff_rank,
                               low_rank_payoff=False)
    out_f = jax.block_until_ready(out_f)
    ref_f = _reference_forward(hidden_states, edges_from, edges_to, params_f,
                               dim_act=dim_act, payoff_rank=payoff_rank,
                               low_rank_payoff=False)
    assert jnp.allclose(out_f, ref_f, atol=2e-5, rtol=2e-5), "full-rank mismatch vs reference"

    print("KERNEL_OK")
</pallas_src>

<mosaic_0001>
module attributes {stable_mosaic.version = 11 : i64} {
  func.func @_lowrank_kernel(%arg0: i32, %arg1: memref<8x32xf32, #tpu.memory_space<vmem>>, %arg2: memref<8x32xf32, #tpu.memory_space<vmem>>, %arg3: memref<32x128xf32, #tpu.memory_space<vmem>>, %arg4: memref<32x128xf32, #tpu.memory_space<vmem>>, %arg5: memref<1x128xf32, #tpu.memory_space<vmem>>, %arg6: memref<128x512xf32, #tpu.memory_space<vmem>>, %arg7: memref<1x512xf32, #tpu.memory_space<vmem>>, %arg8: memref<128x512xf32, #tpu.memory_space<vmem>>, %arg9: memref<1x512xf32, #tpu.memory_space<vmem>>, %arg10: memref<512x128xf32, #tpu.memory_space<vmem>>, %arg11: memref<8x128xf32, #tpu.memory_space<vmem>>) attributes {dimension_semantics = [#tpu.dimension_semantics<parallel>], iteration_bounds = array<i64: 1>, scalar_prefetch = 0 : i64, scratch_operands = 0 : i64, tpu.core_type = #tpu.core_type<tc>, window_params = [{transform_indices = @transform_0, window_bounds = array<i64: 8, 32>}, {transform_indices = @transform_1, window_bounds = array<i64: 8, 32>}, {pipeline_mode = #tpu.pipeline_mode<synchronous>, transform_indices = @transform_2, window_bounds = array<i64: 32, 128>}, {pipeline_mode = #tpu.pipeline_mode<synchronous>, transform_indices = @transform_3, window_bounds = array<i64: 32, 128>}, {pipeline_mode = #tpu.pipeline_mode<synchronous>, transform_indices = @transform_4, window_bounds = array<i64: 1, 128>}, {pipeline_mode = #tpu.pipeline_mode<synchronous>, transform_indices = @transform_5, window_bounds = array<i64: 128, 512>}, {pipeline_mode = #tpu.pipeline_mode<synchronous>, transform_indices = @transform_6, window_bounds = array<i64: 1, 512>}, {pipeline_mode = #tpu.pipeline_mode<synchronous>, transform_indices = @transform_7, window_bounds = array<i64: 128, 512>}, {pipeline_mode = #tpu.pipeline_mode<synchronous>, transform_indices = @transform_8, window_bounds = array<i64: 1, 512>}, {pipeline_mode = #tpu.pipeline_mode<synchronous>, transform_indices = @transform_9, window_bounds = array<i64: 512, 128>}, {transform_indices = @transform_10, window_bounds = array<i64: 8, 128>}]} {
    %c0 = arith.constant 0 : index
    %c0_0 = arith.constant 0 : index
    %0 = vector.load %arg1[%c0, %c0_0] : memref<8x32xf32, #tpu.memory_space<vmem>>, vector<8x32xf32>
    %c0_1 = arith.constant 0 : index
    %c0_2 = arith.constant 0 : index
    %1 = vector.load %arg3[%c0_1, %c0_2] : memref<32x128xf32, #tpu.memory_space<vmem>>, vector<32x128xf32>
    %cst = arith.constant dense<0.000000e+00> : vector<8x128xf32>
    %2 = tpu.matmul %0, %1, %cst {dimension_numbers = #tpu.dot_dimension_numbers<[1], [0], [0], [1], [0, 0, 1, 1], [], []>} : vector<8x32xf32>, vector<32x128xf32>, vector<8x128xf32> -> vector<8x128xf32>
    %c0_3 = arith.constant 0 : index
    %c0_4 = arith.constant 0 : index
    %3 = vector.load %arg2[%c0_3, %c0_4] : memref<8x32xf32, #tpu.memory_space<vmem>>, vector<8x32xf32>
    %c0_5 = arith.constant 0 : index
    %c0_6 = arith.constant 0 : index
    %4 = vector.load %arg4[%c0_5, %c0_6] : memref<32x128xf32, #tpu.memory_space<vmem>>, vector<32x128xf32>
    %cst_7 = arith.constant dense<0.000000e+00> : vector<8x128xf32>
    %5 = tpu.matmul %3, %4, %cst_7 {dimension_numbers = #tpu.dot_dimension_numbers<[1], [0], [0], [1], [0, 0, 1, 1], [], []>} : vector<8x32xf32>, vector<32x128xf32>, vector<8x128xf32> -> vector<8x128xf32>
    %6 = arith.addf %2, %5 : vector<8x128xf32>
    %c0_8 = arith.constant 0 : index
    %c0_9 = arith.constant 0 : index
    %7 = vector.load %arg5[%c0_8, %c0_9] : memref<1x128xf32, #tpu.memory_space<vmem>>, vector<1x128xf32>
    %8 = vector.broadcast %7 : vector<1x128xf32> to vector<8x128xf32>
    %9 = arith.addf %6, %8 : vector<8x128xf32>
    %cst_10 = arith.constant 0.000000e+00 : f32
    %10 = vector.broadcast %cst_10 : f32 to vector<8x128xf32>
    %11 = arith.maximumf %9, %10 : vector<8x128xf32>
    %c0_11 = arith.constant 0 : index
    %c0_12 = arith.constant 0 : index
    %12 = vector.load %arg6[%c0_11, %c0_12] : memref<128x512xf32, #tpu.memory_space<vmem>>, vector<128x512xf32>
    %cst_13 = arith.constant dense<0.000000e+00> : vector<8x512xf32>
    %13 = tpu.matmul %11, %12, %cst_13 {dimension_numbers = #tpu.dot_dimension_numbers<[1], [0], [0], [1], [0, 0, 1, 1], [], []>} : vector<8x128xf32>, vector<128x512xf32>, vector<8x512xf32> -> vector<8x512xf32>
    %c0_14 = arith.constant 0 : index
    %c0_15 = arith.constant 0 : index
    %14 = vector.load %arg7[%c0_14, %c0_15] : memref<1x512xf32, #tpu.memory_space<vmem>>, vector<1x512xf32>
    %15 = vector.broadcast %14 : vector<1x512xf32> to vector<8x512xf32>
    %16 = arith.addf %13, %15 : vector<8x512xf32>
    %c0_16 = arith.constant 0 : index
    %c0_17 = arith.constant 0 : index
    %17 = vector.load %arg8[%c0_16, %c0_17] : memref<128x512xf32, #tpu.memory_space<vmem>>, vector<128x512xf32>
    %cst_18 = arith.constant dense<0.000000e+00> : vector<8x512xf32>
    %18 = tpu.matmul %11, %17, %cst_18 {dimension_numbers = #tpu.dot_dimension_numbers<[1], [0], [0], [1], [0, 0, 1, 1], [], []>} : vector<8x128xf32>, vector<128x512xf32>, vector<8x512xf32> -> vector<8x512xf32>
    %c0_19 = arith.constant 0 : index
    %c0_20 = arith.constant 0 : index
    %19 = vector.load %arg9[%c0_19, %c0_20] : memref<1x512xf32, #tpu.memory_space<vmem>>, vector<1x512xf32>
    %20 = vector.broadcast %19 : vector<1x512xf32> to vector<8x512xf32>
    %21 = arith.addf %18, %20 : vector<8x512xf32>
    %22 = arith.mulf %16, %21 : vector<8x512xf32>
    %c0_21 = arith.constant 0 : index
    %c0_22 = arith.constant 0 : index
    %23 = vector.load %arg10[%c0_21, %c0_22] : memref<512x128xf32, #tpu.memory_space<vmem>>, vector<512x128xf32>
    %cst_23 = arith.constant dense<0.000000e+00> : vector<8x128xf32>
    %24 = tpu.matmul %22, %23, %cst_23 {dimension_numbers = #tpu.dot_dimension_numbers<[1], [0], [0], [1], [0, 0, 1, 1], [], []>} : vector<8x512xf32>, vector<512x128xf32>, vector<8x128xf32> -> vector<8x128xf32>
    %c0_24 = arith.constant 0 : index
    %c0_25 = arith.constant 0 : index
    %25 = vector.load %arg11[%c0_24, %c0_25] : memref<8x128xf32, #tpu.memory_space<vmem>>, vector<8x128xf32>
    tpu.vector_store %arg11[%c0_24, %c0_25], %24 {strides = array<i32>} : memref<8x128xf32, #tpu.memory_space<vmem>>, vector<8x128xf32>,
    return
  }
  func.func @transform_0(%arg0: i32) -> (i32, i32) {
    %c0_i32 = arith.constant 0 : i32
    %c0_i32_0 = arith.constant 0 : i32
    return %arg0, %c0_i32 : i32, i32
  }
  func.func @transform_1(%arg0: i32) -> (i32, i32) {
    %c0_i32 = arith.constant 0 : i32
    %c0_i32_0 = arith.constant 0 : i32
    return %arg0, %c0_i32 : i32, i32
  }
  func.func @transform_2(%arg0: i32) -> (i32, i32) {
    %c0_i32 = arith.constant 0 : i32
    %c0_i32_0 = arith.constant 0 : i32
    %c0_i32_1 = arith.constant 0 : i32
    return %c0_i32, %c0_i32_0 : i32, i32
  }
  func.func @transform_3(%arg0: i32) -> (i32, i32) {
    %c0_i32 = arith.constant 0 : i32
    %c0_i32_0 = arith.constant 0 : i32
    %c0_i32_1 = arith.constant 0 : i32
    return %c0_i32, %c0_i32_0 : i32, i32
  }
  func.func @transform_4(%arg0: i32) -> (i32, i32) {
    %c0_i32 = arith.constant 0 : i32
    %c0_i32_0 = arith.constant 0 : i32
    %c0_i32_1 = arith.constant 0 : i32
    return %c0_i32, %c0_i32_0 : i32, i32
  }
  func.func @transform_5(%arg0: i32) -> (i32, i32) {
    %c0_i32 = arith.constant 0 : i32
    %c0_i32_0 = arith.constant 0 : i32
    %c0_i32_1 = arith.constant 0 : i32
    return %c0_i32, %c0_i32_0 : i32, i32
  }
  func.func @transform_6(%arg0: i32) -> (i32, i32) {
    %c0_i32 = arith.constant 0 : i32
    %c0_i32_0 = arith.constant 0 : i32
    %c0_i32_1 = arith.constant 0 : i32
    return %c0_i32, %c0_i32_0 : i32, i32
  }
  func.func @transform_7(%arg0: i32) -> (i32, i32) {
    %c0_i32 = arith.constant 0 : i32
    %c0_i32_0 = arith.constant 0 : i32
    %c0_i32_1 = arith.constant 0 : i32
    return %c0_i32, %c0_i32_0 : i32, i32
  }
  func.func @transform_8(%arg0: i32) -> (i32, i32) {
    %c0_i32 = arith.constant 0 : i32
    %c0_i32_0 = arith.constant 0 : i32
    %c0_i32_1 = arith.constant 0 : i32
    return %c0_i32, %c0_i32_0 : i32, i32
  }
  func.func @transform_9(%arg0: i32) -> (i32, i32) {
    %c0_i32 = arith.constant 0 : i32
    %c0_i32_0 = arith.constant 0 : i32
    %c0_i32_1 = arith.constant 0 : i32
    return %c0_i32, %c0_i32_0 : i32, i32
  }
  func.func @transform_10(%arg0: i32) -> (i32, i32) {
    %c0_i32 = arith.constant 0 : i32
    %c0_i32_0 = arith.constant 0 : i32
    return %arg0, %c0_i32 : i32, i32
  }
}

</mosaic_0001>

<bundles_post_ra>
// kernel: tpu_custom_call.1
= control target key start
LH: loop header
LB: loop body
LE: loop exit
PB: predicated region body
PF: predicated region fallthrough
CT: control target
= control target key end

     0   :  { %15 = vsyncpa [#allocation3], 0  ;;  %s1697_s0 = inlined_call_operand.hbm [shape: f32[8,32], index: 0, kind: input, shape index: {}]   ;;  %s1698_s1 = inlined_call_operand.hbm [shape: f32[8,32], index: 1, kind: input, shape index: {}]   ;;  %s1699_s2 = inlined_call_operand.hbm [shape: f32[32,128], index: 2, kind: input, shape index: {}]   ;;  %s1700_s3 = inlined_call_operand.hbm [shape: f32[32,128], index: 3, kind: input, shape index: {}]   ;;  %s1701_s4 = inlined_call_operand.vmem [shape: f32[1,128], index: 4, kind: input, shape index: {}]   ;;  %s1702_s5 = inlined_call_operand.hbm [shape: f32[128,512], index: 5, kind: input, shape index: {}]   ;;  %s1703_s6 = inlined_call_operand.vmem [shape: f32[1,512], index: 6, kind: input, shape index: {}]   ;;  %s1704_s7 = inlined_call_operand.hbm [shape: f32[128,512], index: 7, kind: input, shape index: {}]   ;;  %s1705_s8 = inlined_call_operand.vmem [shape: f32[1,512], index: 8, kind: input, shape index: {}]   ;;  %s1706_s9 = inlined_call_operand.hbm [shape: f32[512,128], index: 9, kind: input, shape index: {}]   ;;  %s1707_s10 = inlined_call_operand.hbm [shape: f32[8,128], index: 10, kind: output, shape index: {}]  }
   0x1   :  { %16 = vsyncpa [#allocation6], 0 }
   0x2   :  { %17 = vsyncpa [#allocation9], 0 }
   0x3   :  { %18 = vsyncpa [#allocation12], 0 }
   0x4   :  { %19 = vsyncpa [#allocation4], 0  ;;  %s1486_s13 = smov [#allocation5]   ;;  %s1300_s17 = scalar_lea.hbm %s1698_s1, 128 }
   0x5   :  { %s36_s14 = sshll.u32 %s1486_s13, 4  ;;  %p1301_p0 = scmp.ne.s32.totalorder %s1698_s1, %s1300_s17  ;;  %s37_s14 = int_to_ptr.vmem [resolvable:$true] %s36_s14 }
   0x6   :  { %p1304_p1 = scmp.lt.u32.totalorder %s1300_s17, %s1698_s1 }
   0x8   :  { %p1306_p2 = pnand %p1304_p1, %p1301_p0 }
   0xa   :  { %1309 = shalt.err (!%p1306_p2)
}
   0xb   :  { %s1310_s22 = scalar_lea.vmem %s37_s14, 128  ;;  %p1315_p4 = scmp.lt.s32.totalorder %s37_s14, %s37_s14 }
   0xc   :  { %p1311_p3 = scmp.ne.s32.totalorder %s37_s14, %s1310_s22  ;;  %p1316_p5 = scmp.lt.s32.totalorder %s1310_s22, %s1310_s22 }
   0xe   :  { %p1317_p6 = por %p1316_p5, %p1315_p4 }
  0x10   :  { %p1318_p7 = pnand %p1317_p6, %p1311_p3 }
  0x12   :  { %1321 = shalt.err (!%p1318_p7)
}
  0x13   :  { %39 = dma.hbm_to_vmem [thread:$0]  %s1698_s1, 128, %s37_s14, [#allocation6]  }
  0x14   :  { %s1487_s25 = smov [#allocation8]   ;;  %s1322_s29 = scalar_lea.hbm %s1700_s3, 512 }
  0x15   :  { %s57_s26 = sshll.u32 %s1487_s25, 4  ;;  %p1323_p8 = scmp.ne.s32.totalorder %s1700_s3, %s1322_s29  ;;  %s58_s26 = int_to_ptr.vmem [resolvable:$true] %s57_s26 }
  0x16   :  { %p1326_p9 = scmp.lt.u32.totalorder %s1322_s29, %s1700_s3 }
  0x18   :  { %p1328_p10 = pnand %p1326_p9, %p1323_p8 }
  0x1a   :  { %1331 = shalt.err (!%p1328_p10)
}
  0x1b   :  { %s1332_s15 = scalar_lea.vmem %s58_s26, 512  ;;  %p1337_p12 = scmp.lt.s32.totalorder %s58_s26, %s58_s26 }
  0x1c   :  { %p1333_p11 = scmp.ne.s32.totalorder %s58_s26, %s1332_s15  ;;  %p1338_p13 = scmp.lt.s32.totalorder %s1332_s15, %s1332_s15 }
  0x1e   :  { %p1339_p0 = por %p1338_p13, %p1337_p12 }
  0x20   :  { %p1340_p1 = pnand %p1339_p0, %p1333_p11 }
  0x22   :  { %1343 = shalt.err (!%p1340_p1)
}
  0x23   :  { %s1488_s1 = smov 128   ;;  %s1489_s14 = smov 8  }
  0x24   :  { %63 = dma.hbm_to_vmem [thread:$0]  %s1700_s3, 512, %s58_s26, [#allocation9], %s1488_s1, %s1488_s1, %s1489_s14  }
  0x25   :  { %s1490_s18 = smov [#allocation11]   ;;  %s1491_s20 = smov [#allocation2]  }
  0x26   :  { %s85_s19 = sshll.u32 %s1490_s18, 4  ;;  %s26_s21 = sshll.u32 %s1491_s20, 4  ;;  %s86_s19 = int_to_ptr.vmem [resolvable:$true] %s85_s19  ;;  %s27_s21 = int_to_ptr.vmem [resolvable:$true] %s26_s21 }
  0x27   :  { %s1344_s24 = scalar_lea.hbm %s1704_s7, 8192 }
  0x28   :  { %p1345_p2 = scmp.ne.s32.totalorder %s1704_s7, %s1344_s24  ;;  %p1348_p3 = scmp.lt.u32.totalorder %s1344_s24, %s1704_s7 }
  0x2a   :  { %p1350_p4 = pnand %p1348_p3, %p1345_p2 }
  0x2c   :  { %1353 = shalt.err (!%p1350_p4)
}
  0x2d   :  { %s1354_s3 = scalar_lea.vmem %s86_s19, 8192  ;;  %p1359_p6 = scmp.lt.s32.totalorder %s86_s19, %s86_s19 }
  0x2e   :  { %p1355_p5 = scmp.ne.s32.totalorder %s86_s19, %s1354_s3  ;;  %p1360_p7 = scmp.lt.s32.totalorder %s1354_s3, %s1354_s3 }
  0x30   :  { %p1361_p8 = por %p1360_p7, %p1359_p6 }
  0x32   :  { %p1362_p9 = pnand %p1361_p8, %p1355_p5 }
  0x34   :  { %1365 = shalt.err (!%p1362_p9)
}
  0x35   :  { %s1492_s26 = smov 512   ;;  %s1493_s30 = smov 32  }
  0x36   :  { %91 = dma.hbm_to_vmem [thread:$0]  %s1704_s7, 8192, %s86_s19, [#allocation12], %s1492_s26, %s1492_s26, %s1493_s30  }
  0x37   :  { %s1366_s16 = scalar_lea.hbm %s1697_s0, 128 }
  0x38   :  { %p1367_p10 = scmp.ne.s32.totalorder %s1697_s0, %s1366_s16  ;;  %p1370_p11 = scmp.lt.u32.totalorder %s1366_s16, %s1697_s0 }
  0x3a   :  { %p1372_p12 = pnand %p1370_p11, %p1367_p10 }
  0x3c   :  { %1375 = shalt.err (!%p1372_p12)
}
  0x3d   :  { %s1376_s23 = scalar_lea.vmem %s27_s21, 128  ;;  %p1381_p0 = scmp.lt.s32.totalorder %s27_s21, %s27_s21 }
  0x3e   :  { %p1377_p13 = scmp.ne.s32.totalorder %s27_s21, %s1376_s23  ;;  %p1382_p1 = scmp.lt.s32.totalorder %s1376_s23, %s1376_s23 }
  0x40   :  { %p1383_p2 = por %p1382_p1, %p1381_p0 }
  0x42   :  { %p1384_p3 = pnand %p1383_p2, %p1377_p13 }
  0x44   :  { %1387 = shalt.err (!%p1384_p3)
}
  0x45   :  { %29 = dma.hbm_to_vmem [thread:$0]  %s1697_s0, 128, %s27_s21, [#allocation3]  }
  0x46   :  { %s1494_s24 = smov [#allocation7]   ;;  %s1495_s27 = smov [#allocation10]  }
  0x47   :  { %s45_s25 = sshll.u32 %s1494_s24, 4  ;;  %s71_s28 = sshll.u32 %s1495_s27, 4  ;;  %s46_s25 = int_to_ptr.vmem [resolvable:$true] %s45_s25  ;;  %s1610_s28 = int_to_ptr.vmem [resolvable:$true] %s71_s28 }
  0x48   :  { %s1388_s11 = scalar_lea.hbm %s1699_s2, 512 }
  0x49   :  { %p1389_p4 = scmp.ne.s32.totalorder %s1699_s2, %s1388_s11  ;;  %p1392_p5 = scmp.lt.u32.totalorder %s1388_s11, %s1699_s2 }
  0x4b   :  { %p1394_p6 = pnand %p1392_p5, %p1389_p4 }
  0x4d   :  { %1397 = shalt.err (!%p1394_p6)
}
  0x4e   :  { %s1398_s0 = scalar_lea.vmem %s46_s25, 512  ;;  %p1403_p8 = scmp.lt.s32.totalorder %s46_s25, %s46_s25 }
  0x4f   :  { %p1399_p7 = scmp.ne.s32.totalorder %s46_s25, %s1398_s0  ;;  %p1404_p9 = scmp.lt.s32.totalorder %s1398_s0, %s1398_s0 }
  0x51   :  { %p1405_p10 = por %p1404_p9, %p1403_p8 }
  0x53   :  { %p1406_p11 = pnand %p1405_p10, %p1399_p7 }
  0x55   :  { %1409 = shalt.err (!%p1406_p11)
}
  0x56   :  { %51 = dma.hbm_to_vmem [thread:$0]  %s1699_s2, 512, %s46_s25, [#allocation6], %s1488_s1, %s1488_s1, %s1489_s14  }
  0x57   :  { %s1410_s22 = scalar_lea.hbm %s1702_s5, 8192 }
  0x58   :  { %p1411_p12 = scmp.ne.s32.totalorder %s1702_s5, %s1410_s22  ;;  %p1414_p13 = scmp.lt.u32.totalorder %s1410_s22, %s1702_s5 }
  0x5a   :  { %p1416_p0 = pnand %p1414_p13, %p1411_p12 }
  0x5c   :  { %1419 = shalt.err (!%p1416_p0)
}
  0x5d   :  { %s1420_s27 = scalar_lea.vmem %s1610_s28, 8192  ;;  %p1425_p2 = scmp.lt.s32.totalorder %s1610_s28, %s1610_s28 }
  0x5e   :  { %p1421_p1 = scmp.ne.s32.totalorder %s1610_s28, %s1420_s27  ;;  %p1426_p3 = scmp.lt.s32.totalorder %s1420_s27, %s1420_s27 }
  0x60   :  { %p1427_p4 = por %p1426_p3, %p1425_p2 }
  0x62   :  { %p1428_p5 = pnand %p1427_p4, %p1421_p1 }
  0x64   :  { %1431 = shalt.err (!%p1428_p5)
}
  0x65   :  { %77 = dma.hbm_to_vmem [thread:$0]  %s1702_s5, 8192, %s1610_s28, [#allocation9], %s1492_s26, %s1492_s26, %s1493_s30  }
  0x66   :  { %s1496_s29 = smov [#allocation13]   ;;  %s1432_s13 = scalar_lea.hbm %s1706_s9, 8192 }
  0x67   :  { %s99_s3 = sshll.u32 %s1496_s29, 4  ;;  %p1433_p6 = scmp.ne.s32.totalorder %s1706_s9, %s1432_s13  ;;  %s100_s3 = int_to_ptr.vmem [resolvable:$true] %s99_s3 }
  0x68   :  { %p1436_p7 = scmp.lt.u32.totalorder %s1432_s13, %s1706_s9 }
  0x6a   :  { %p1438_p8 = pnand %p1436_p7, %p1433_p6 }
  0x6c   :  { %1441 = shalt.err (!%p1438_p8)
}
  0x6d   :  { %s1442_s17 = scalar_lea.vmem %s100_s3, 8192  ;;  %p1447_p10 = scmp.lt.s32.totalorder %s100_s3, %s100_s3 }
  0x6e   :  { %p1443_p9 = scmp.ne.s32.totalorder %s100_s3, %s1442_s17  ;;  %p1448_p11 = scmp.lt.s32.totalorder %s1442_s17, %s1442_s17 }
  0x70   :  { %p1449_p12 = por %p1448_p11, %p1447_p10 }
  0x72   :  { %p1450_p13 = pnand %p1449_p12, %p1443_p9 }
  0x74   :  { %1453 = shalt.err (!%p1450_p13)
}
  0x75   :  { %105 = dma.hbm_to_vmem [thread:$0]  %s1706_s9, 8192, %s100_s3, [#allocation12], %s1488_s1, %s1488_s1, %s1489_s14  }
  0x76   :  { %1476 = dma.done.wait [#allocation3], 128  }
  0x77   :  { %1477 = vsyncadd [#allocation3], 4294967168 }
  0x78   :  { %1478 = dma.done.wait [#allocation6], 640  }
  0x79   :  { %1479 = vsyncadd [#allocation6], 4294966656 }
  0x7a   :  { %1480 = dma.done.wait [#allocation9], 8704  }
  0x7b   :  { %1481 = vsyncadd [#allocation9], 4294958592 }
  0x7c   :  { %1482 = dma.done.wait [#allocation12], 16384  }
  0x7d   :  { %1483 = vsyncadd [#allocation12], 4294950912  ;;  %v1497_v0 = vmov 0.0|0.0   ;;  %vm1498_vm0 = vmmov 0   ;;  %v1499_v1 = vmov 0.0   ;;  %v133_v2 = vld [vmem:[#allocation8] sm:$0xff] }
  0x7e   :  { %1081 = vmatprep.subr.bf16.mxu0 %v1497_v0  ;;  %1087 = vmatprep.subr.bf16.mxu1 %v1497_v0  ;;  %v134_v3 = vld [vmem:[#allocation8 + $0x8] sm:$0xff]  ;;  %v128_v4 = vld [vmem:[#allocation7] sm:$0xff]  ;;  %v135_v7 = vld [vmem:[#allocation8 + $0x10] sm:$0xff]  ;;  %vm137_vm1 = vcmask 261120  }
  0x7f   :  { %1067 = vmatprep.mubr.msk.f32.mxu0 %vm1498_vm0, %v1499_v1  ;;  %1078 = vmatprep.mubr.msk.f32.mxu1 %vm1498_vm0, %v1499_v1  ;;  %v1082_v5 = vpack.c.bf16 %v134_v3, %v133_v2  ;;  %v129_v6 = vld [vmem:[#allocation7 + $0x8] sm:$0xff]  ;;  %v136_v8 = vld [vmem:[#allocation8 + $0x18] sm:$0xff]  ;;  %v130_v10 = vld [vmem:[#allocation7 + $0x10] sm:$0xff] }
  0x80   :  { %v1088_v9 = vpack.c.bf16 %v129_v6, %v128_v4  ;;  %v131_v11 = vld [vmem:[#allocation7 + $0x18] sm:$0xff]  ;;  %v1085_v12 = vpack.c.bf16 %v136_v8, %v135_v7  ;;  %v294_v13 = vld [vmem:[#allocation10 + $0x8] sm:$0xff]  ;;  %v293_v19 = vld [vmem:[#allocation10] sm:$0xff] }
  0x81   :  { %1083 = vmatpush3.bf16.msra.mxu0 %v1082_v5  ;;  %v298_v14 = vld [vmem:[#allocation10 + $0x28] sm:$0xff]  ;;  %v1091_v15 = vpack.c.bf16 %v131_v11, %v130_v10  ;;  %v296_v17 = vld [vmem:[#allocation10 + $0x18] sm:$0xff]  ;;  %v297_v21 = vld [vmem:[#allocation10 + $0x20] sm:$0xff] }
  0x82   :  { %1089 = vmatpush3.bf16.msra.mxu1 %v1088_v9  ;;  %1084 = vmatprep.subr.bf16.mxu0 %v1497_v0  ;;  %v1093_v16 = vpack.c.bf16 %v298_v14, %v294_v13  ;;  %v300_v18 = vld [vmem:[#allocation10 + $0x38] sm:$0xff]  ;;  %v295_v22 = vld [vmem:[#allocation10 + $0x10] sm:$0xff]  ;;  %v302_v24 = vld [vmem:[#allocation10 + $0x48] sm:$0xff]  ;;  %v1095_v29 = vpack.c.bf16 %v297_v21, %v293_v19 }
  0x83   :  { %1090 = vmatprep.subr.bf16.mxu1 %v1497_v0  ;;  %v1125_v20 = vpack.c.bf16 %v300_v18, %v296_v17  ;;  %v299_v23 = vld [vmem:[#allocation10 + $0x30] sm:$0xff]  ;;  %v306_v25 = vld [vmem:[#allocation10 + $0x68] sm:$0xff]  ;;  %v304_v26 = vld [vmem:[#allocation10 + $0x58] sm:$0xff] }
  0x84   :  { %v132_v27 = vld [vmem:[#allocation5] sm:$0xff]  ;;  %v127_v28 = vld [vmem:[#allocation2] sm:$0xff]  ;;  %v1127_v31 = vpack.c.bf16 %v299_v23, %v295_v22  ;;  %v1097_v32 = vpack.c.bf16 %v306_v25, %v302_v24  ;;  %v301_v33 = vld [vmem:[#allocation10 + $0x40] sm:$0xff] }
  0x85   :  { %1086 = vmatpush3.bf16.msra.mxu0 %v1085_v12  ;;  %v308_v30 = vld [vmem:[#allocation10 + $0x78] sm:$0xff]  ;;  %v305_v34 = vld [vmem:[#allocation10 + $0x60] sm:$0xff]  ;;  %v303_v35 = vld [vmem:[#allocation10 + $0x50] sm:$0xff] }
  0x86   :  { %1092 = vmatpush3.bf16.msra.mxu1 %v1091_v15  ;;  %1094 = vmatprep.subr.bf16.mxu0 %v1093_v16  ;;  %v1129_v36 = vpack.c.bf16 %v308_v30, %v304_v26  ;;  %v307_v37 = vld [vmem:[#allocation10 + $0x70] sm:$0xff]  ;;  %v310_v38 = vld [vmem:[#allocation10 + $0x88] sm:$0xff]  ;;  %v312_v40 = vld [vmem:[#allocation10 + $0x98] sm:$0xff]  ;;  %v1099_v42 = vpack.c.bf16 %v305_v34, %v301_v33 }
  0x87   :  { %1126 = vmatprep.subr.bf16.mxu1 %v1125_v20  ;;  %v314_v39 = vld [vmem:[#allocation10 + $0xa8] sm:$0xff]  ;;  %v316_v41 = vld [vmem:[#allocation10 + $0xb8] sm:$0xff]  ;;  %v1131_v43 = vpack.c.bf16 %v307_v37, %v303_v35  ;;  %v309_v45 = vld [vmem:[#allocation10 + $0x80] sm:$0xff] }
  0x88   :  { %1068 = vmatmul.mubr.msk.f32.vlgmr.msra.gmra.mrb[0].mxu0 %vm137_vm1, %v132_v27  ;;  %v1101_v44 = vpack.c.bf16 %v314_v39, %v310_v38  ;;  %v313_v46 = vld [vmem:[#allocation10 + $0xa0] sm:$0xff]  ;;  %v311_v47 = vld [vmem:[#allocation10 + $0x90] sm:$0xff]  ;;  %v1133_v48 = vpack.c.bf16 %v316_v41, %v312_v40  ;;  %v318_v50 = vld [vmem:[#allocation10 + $0xc8] sm:$0xff] }
  0x89   :  { %1079 = vmatmul.mubr.msk.f32.vlgmr.msra.gmra.mrb[0].mxu1 %vm137_vm1, %v127_v28  ;;  %1096 = vmatpush1.bf16.msra.mxu0 %v1095_v29  ;;  %v315_v49 = vld [vmem:[#allocation10 + $0xb0] sm:$0xff]  ;;  %v322_v51 = vld [vmem:[#allocation10 + $0xe8] sm:$0xff]  ;;  %v320_v52 = vld [vmem:[#allocation10 + $0xd8] sm:$0xff]  ;;  %v1103_v54 = vpack.c.bf16 %v313_v46, %v309_v45 }
  0x8a   :  { %1128 = vmatpush1.bf16.msra.mxu1 %v1127_v31  ;;  %1098 = vmatprep.subr.bf16.mxu0 %v1097_v32  ;;  %v324_v53 = vld [vmem:[#allocation10 + $0xf8] sm:$0xff]  ;;  %v1135_v55 = vpack.c.bf16 %v315_v49, %v311_v47  ;;  %v1105_v56 = vpack.c.bf16 %v322_v51, %v318_v50  ;;  %v317_v57 = vld [vmem:[#allocation10 + $0xc0] sm:$0xff]  ;;  %v319_v59 = vld [vmem:[#allocation10 + $0xd0] sm:$0xff] }
  0x8b   :  { %1130 = vmatprep.subr.bf16.mxu1 %v1129_v36  ;;  %443 = vmatprep.mubr.f32.mxu0 %v1499_v1  ;;  %v321_v58 = vld [vmem:[#allocation10 + $0xe0] sm:$0xff]  ;;  %v1137_v60 = vpack.c.bf16 %v324_v53, %v320_v52  ;;  %v323_v61 = vld [vmem:[#allocation10 + $0xf0] sm:$0xff]  ;;  %v326_v62 = vld [vmem:[#allocation10 + $0x108] sm:$0xff] }
  0x8c   :  { %514 = vmatprep.mubr.f32.mxu1 %v1499_v1  ;;  %v330_v63 = vld [vmem:[#allocation10 + $0x128] sm:$0xff]  ;;  %v328_v0 = vld [vmem:[#allocation10 + $0x118] sm:$0xff]  ;;  %v1107_v3 = vpack.c.bf16 %v321_v58, %v317_v57  ;;  %v1139_v4 = vpack.c.bf16 %v323_v61, %v319_v59  ;;  %v325_v6 = vld [vmem:[#allocation10 + $0x100] sm:$0xff] }
  0x8d   :  { %1100 = vmatpush1.bf16.msra.mxu0 %v1099_v42  ;;  %v332_v2 = vld [vmem:[#allocation10 + $0x138] sm:$0xff]  ;;  %v1109_v5 = vpack.c.bf16 %v330_v63, %v326_v62  ;;  %v329_v7 = vld [vmem:[#allocation10 + $0x120] sm:$0xff]  ;;  %v327_v8 = vld [vmem:[#allocation10 + $0x110] sm:$0xff] }
  0x8e   :  { %1132 = vmatpush1.bf16.msra.mxu1 %v1131_v43  ;;  %1102 = vmatprep.subr.bf16.mxu0 %v1101_v44  ;;  %v1141_v9 = vpack.c.bf16 %v332_v2, %v328_v0  ;;  %v331_v10 = vld [vmem:[#allocation10 + $0x130] sm:$0xff]  ;;  %v334_v11 = vld [vmem:[#allocation10 + $0x148] sm:$0xff]  ;;  %v336_v13 = vld [vmem:[#allocation10 + $0x158] sm:$0xff]  ;;  %v1111_v15 = vpack.c.bf16 %v329_v7, %v325_v6 }
  0x8f   :  { %1134 = vmatprep.subr.bf16.mxu1 %v1133_v48  ;;  %v338_v12 = vld [vmem:[#allocation10 + $0x168] sm:$0xff]  ;;  %v340_v14 = vld [vmem:[#allocation10 + $0x178] sm:$0xff]  ;;  %v1143_v16 = vpack.c.bf16 %v331_v10, %v327_v8  ;;  %v333_v18 = vld [vmem:[#allocation10 + $0x140] sm:$0xff] }
  0x90   :  { %v1113_v17 = vpack.c.bf16 %v338_v12, %v334_v11  ;;  %v337_v19 = vld [vmem:[#allocation10 + $0x160] sm:$0xff]  ;;  %v335_v20 = vld [vmem:[#allocation10 + $0x150] sm:$0xff]  ;;  %v1145_v21 = vpack.c.bf16 %v340_v14, %v336_v13  ;;  %v342_v23 = vld [vmem:[#allocation10 + $0x188] sm:$0xff] }
  0x91   :  { %1104 = vmatpush1.bf16.msra.mxu0 %v1103_v54  ;;  %v339_v22 = vld [vmem:[#allocation10 + $0x170] sm:$0xff]  ;;  %v346_v24 = vld [vmem:[#allocation10 + $0x1a8] sm:$0xff]  ;;  %v344_v25 = vld [vmem:[#allocation10 + $0x198] sm:$0xff]  ;;  %v1115_v27 = vpack.c.bf16 %v337_v19, %v333_v18 }
  0x92   :  { %1136 = vmatpush1.bf16.msra.mxu1 %v1135_v55  ;;  %1106 = vmatprep.subr.bf16.mxu0 %v1105_v56  ;;  %v348_v26 = vld [vmem:[#allocation10 + $0x1b8] sm:$0xff]  ;;  %v1147_v28 = vpack.c.bf16 %v339_v22, %v335_v20  ;;  %v1117_v29 = vpack.c.bf16 %v346_v24, %v342_v23  ;;  %v341_v30 = vld [vmem:[#allocation10 + $0x180] sm:$0xff]  ;;  %v343_v33 = vld [vmem:[#allocation10 + $0x190] sm:$0xff] }
  0x93   :  { %1138 = vmatprep.subr.bf16.mxu1 %v1137_v60  ;;  %v345_v31 = vld [vmem:[#allocation10 + $0x1a0] sm:$0xff]  ;;  %v1149_v32 = vpack.c.bf16 %v348_v26, %v344_v25  ;;  %v347_v34 = vld [vmem:[#allocation10 + $0x1b0] sm:$0xff]  ;;  %v350_v37 = vld [vmem:[#allocation10 + $0x1c8] sm:$0xff] }
  0x94   :  { %v1119_v35 = vpack.c.bf16 %v345_v31, %v341_v30  ;;  %v1151_v36 = vpack.c.bf16 %v347_v34, %v343_v33  ;;  %v354_v38 = vld [vmem:[#allocation10 + $0x1e8] sm:$0xff]  ;;  %v352_v39 = vld [vmem:[#allocation10 + $0x1d8] sm:$0xff]  ;;  %v349_v42 = vld [vmem:[#allocation10 + $0x1c0] sm:$0xff] }
  0x95   :  { %1108 = vmatpush1.bf16.msra.mxu0 %v1107_v3  ;;  %v1121_v40 = vpack.c.bf16 %v354_v38, %v350_v37  ;;  %v356_v41 = vld [vmem:[#allocation10 + $0x1f8] sm:$0xff]  ;;  %v353_v43 = vld [vmem:[#allocation10 + $0x1e0] sm:$0xff]  ;;  %v351_v46 = vld [vmem:[#allocation10 + $0x1d0] sm:$0xff] }
  0x96   :  { %1140 = vmatpush1.bf16.msra.mxu1 %v1139_v4  ;;  %1110 = vmatprep.subr.bf16.mxu0 %v1109_v5  ;;  %v1153_v44 = vpack.c.bf16 %v356_v41, %v352_v39  ;;  %v1123_v45 = vpack.c.bf16 %v353_v43, %v349_v42  ;;  %v355_v47 = vld [vmem:[#allocation10 + $0x1f0] sm:$0xff]  ;;  %v522_v49 = vld [vmem:[#allocation11 + $0x8] sm:$0xff]  ;;  %v524_v51 = vld [vmem:[#allocation11 + $0x18] sm:$0xff] }
  0x97   :  { %1142 = vmatprep.subr.bf16.mxu1 %v1141_v9  ;;  %v1155_v48 = vpack.c.bf16 %v355_v47, %v351_v46  ;;  %v526_v50 = vld [vmem:[#allocation11 + $0x28] sm:$0xff]  ;;  %v528_v53 = vld [vmem:[#allocation11 + $0x38] sm:$0xff]  ;;  %v978_v57 = vld [vmem:[%s1701_s4] ss:$0 sm:$0xff] }
  0x98   :  { %v1157_v52 = vpack.c.bf16 %v526_v50, %v522_v49  ;;  %v1189_v54 = vpack.c.bf16 %v528_v53, %v524_v51  ;;  %v521_v59 = vld [vmem:[#allocation11] sm:$0xff]  ;;  %v523_v63 = vld [vmem:[#allocation11 + $0x10] sm:$0xff]  ;;  %v530_v2 = vld [vmem:[#allocation11 + $0x48] sm:$0xff] }
  0x99   :  { %1112 = vmatpush1.bf16.msra.mxu0 %v1111_v15  ;;  %v525_v60 = vld [vmem:[#allocation11 + $0x20] sm:$0xff]  ;;  %v527_v0 = vld [vmem:[#allocation11 + $0x30] sm:$0xff]  ;;  %v534_v3 = vld [vmem:[#allocation11 + $0x68] sm:$0xff] }
  0x9a   :  { %1144 = vmatpush1.bf16.msra.mxu1 %v1143_v16  ;;  %1114 = vmatprep.subr.bf16.mxu0 %v1113_v17  ;;  %v532_v4 = vld [vmem:[#allocation11 + $0x58] sm:$0xff]  ;;  %v1159_v7 = vpack.c.bf16 %v525_v60, %v521_v59  ;;  %v1191_v8 = vpack.c.bf16 %v527_v0, %v523_v63  ;;  %v529_v9 = vld [vmem:[#allocation11 + $0x40] sm:$0xff]  ;;  %v1161_v12 = vpack.c.bf16 %v534_v3, %v530_v2  ;;  %v531_v14 = vld [vmem:[#allocation11 + $0x50] sm:$0xff] }
  0x9b   :  { %1146 = vmatprep.subr.bf16.mxu1 %v1145_v21  ;;  %v536_v5 = vld [vmem:[#allocation11 + $0x78] sm:$0xff]  ;;  %v533_v10 = vld [vmem:[#allocation11 + $0x60] sm:$0xff]  ;;  %v535_v15 = vld [vmem:[#allocation11 + $0x70] sm:$0xff] }
  0x9c   :  { %v1193_v13 = vpack.c.bf16 %v536_v5, %v532_v4  ;;  %v538_v16 = vld [vmem:[#allocation11 + $0x88] sm:$0xff]  ;;  %v540_v18 = vld [vmem:[#allocation11 + $0x98] sm:$0xff]  ;;  %v1163_v20 = vpack.c.bf16 %v533_v10, %v529_v9  ;;  %v1195_v21 = vpack.c.bf16 %v535_v15, %v531_v14  ;;  %v537_v22 = vld [vmem:[#allocation11 + $0x80] sm:$0xff] }
  0x9d   :  { %1116 = vmatpush1.bf16.msra.mxu0 %v1115_v27  ;;  %v542_v17 = vld [vmem:[#allocation11 + $0xa8] sm:$0xff]  ;;  %v544_v19 = vld [vmem:[#allocation11 + $0xb8] sm:$0xff]  ;;  %v541_v23 = vld [vmem:[#allocation11 + $0xa0] sm:$0xff] }
  0x9e   :  { %1148 = vmatpush1.bf16.msra.mxu1 %v1147_v28  ;;  %1118 = vmatprep.subr.bf16.mxu0 %v1117_v29  ;;  %v1165_v24 = vpack.c.bf16 %v542_v17, %v538_v16  ;;  %v1197_v25 = vpack.c.bf16 %v544_v19, %v540_v18  ;;  %v539_v26 = vld [vmem:[#allocation11 + $0x90] sm:$0xff]  ;;  %v546_v28 = vld [vmem:[#allocation11 + $0xc8] sm:$0xff]  ;;  %v548_v30 = vld [vmem:[#allocation11 + $0xd8] sm:$0xff] }
  0x9f   :  { %1150 = vmatprep.subr.bf16.mxu1 %v1149_v32  ;;  %v543_v27 = vld [vmem:[#allocation11 + $0xb0] sm:$0xff]  ;;  %v550_v29 = vld [vmem:[#allocation11 + $0xe8] sm:$0xff]  ;;  %v552_v31 = vld [vmem:[#allocation11 + $0xf8] sm:$0xff]  ;;  %v1167_v32 = vpack.c.bf16 %v541_v23, %v537_v22 }
  0xa0   :  { %v1199_v33 = vpack.c.bf16 %v543_v27, %v539_v26  ;;  %v545_v34 = vld [vmem:[#allocation11 + $0xc0] sm:$0xff]  ;;  %v1201_v37 = vpack.c.bf16 %v552_v31, %v548_v30  ;;  %v547_v38 = vld [vmem:[#allocation11 + $0xd0] sm:$0xff]  ;;  %v558_v41 = vld [vmem:[#allocation11 + $0x128] sm:$0xff] }
  0xa1   :  { %1120 = vmatpush1.bf16.msra.mxu0 %v1119_v35  ;;  %v549_v35 = vld [vmem:[#allocation11 + $0xe0] sm:$0xff]  ;;  %v551_v39 = vld [vmem:[#allocation11 + $0xf0] sm:$0xff]  ;;  %v556_v42 = vld [vmem:[#allocation11 + $0x118] sm:$0xff] }
  0xa2   :  { %1152 = vmatpush1.bf16.msra.mxu1 %v1151_v36  ;;  %1122 = vmatprep.subr.bf16.mxu0 %v1121_v40  ;;  %v1169_v36 = vpack.c.bf16 %v550_v29, %v546_v28  ;;  %v554_v40 = vld [vmem:[#allocation11 + $0x108] sm:$0xff]  ;;  %v560_v43 = vld [vmem:[#allocation11 + $0x138] sm:$0xff]  ;;  %v557_v46 = vld [vmem:[#allocation11 + $0x120] sm:$0xff] }
  0xa3   :  { %1154 = vmatprep.subr.bf16.mxu1 %v1153_v44  ;;  %v1171_v44 = vpack.c.bf16 %v549_v35, %v545_v34  ;;  %v1173_v47 = vpack.c.bf16 %v558_v41, %v554_v40  ;;  %v555_v49 = vld [vmem:[#allocation11 + $0x110] sm:$0xff]  ;;  %v562_v51 = vld [vmem:[#allocation11 + $0x148] sm:$0xff]  ;;  %v564_v53 = vld [vmem:[#allocation11 + $0x158] sm:$0xff] }
  0xa4   :  { %v559_v50 = vld [vmem:[#allocation11 + $0x130] sm:$0xff]  ;;  %v570_v63 = vld [vmem:[#allocation11 + $0x188] sm:$0xff]  ;;  %v572_v2 = vld [vmem:[#allocation11 + $0x198] sm:$0xff] }
  0xa5   :  { %1124 = vmatpush1.bf16.msra.mxu0 %v1123_v45  ;;  %v553_v45 = vld [vmem:[#allocation11 + $0x100] sm:$0xff]  ;;  %v574_v0 = vld [vmem:[#allocation11 + $0x1a8] sm:$0xff]  ;;  %v576_v3 = vld [vmem:[#allocation11 + $0x1b8] sm:$0xff] }
  0xa6   :  { %1156 = vmatpush1.bf16.msra.mxu1 %v1155_v48  ;;  %1158 = vmatprep.subr.bf16.mxu0 %v1157_v52  ;;  %v1205_v48 = vpack.c.bf16 %v560_v43, %v556_v42  ;;  %v566_v52 = vld [vmem:[#allocation11 + $0x168] sm:$0xff]  ;;  %v1213_v9 = vpack.c.bf16 %v576_v3, %v572_v2  ;;  %v571_v10 = vld [vmem:[#allocation11 + $0x190] sm:$0xff]  ;;  %v580_v15 = vld [vmem:[#allocation11 + $0x1d8] sm:$0xff] }
  0xa7   :  { %1190 = vmatprep.subr.bf16.mxu1 %v1189_v54  ;;  %v568_v54 = vld [vmem:[#allocation11 + $0x178] sm:$0xff]  ;;  %v1177_v59 = vpack.c.bf16 %v566_v52, %v562_v51  ;;  %v582_v14 = vld [vmem:[#allocation11 + $0x1e8] sm:$0xff]  ;;  %v577_v19 = vld [vmem:[#allocation11 + $0x1c0] sm:$0xff] }
  0xa8   :  { %v1209_v60 = vpack.c.bf16 %v568_v54, %v564_v53  ;;  %v584_v16 = vld [vmem:[#allocation11 + $0x1f8] sm:$0xff]  ;;  %v581_v22 = vld [vmem:[#allocation11 + $0x1e0] sm:$0xff]  ;;  %v579_v23 = vld [vmem:[#allocation11 + $0x1d0] sm:$0xff] }
  0xa9   :  { %v769_v27 = vld [vmem:[#allocation13 + $0x80] sm:$0xff]  ;;  %v770_v28 = vld [vmem:[#allocation13 + $0x88] sm:$0xff]  ;;  %v772_v40 = vld [vmem:[#allocation13 + $0x98] sm:$0xff] }
  0xaa   :  { %v801_v29 = vld [vmem:[#allocation13 + $0x180] sm:$0xff]  ;;  %v1221_v30 = vpack.c.bf16 %v770_v28, %v769_v27  ;;  %v802_v31 = vld [vmem:[#allocation13 + $0x188] sm:$0xff]  ;;  %v803_v41 = vld [vmem:[#allocation13 + $0x190] sm:$0xff] }
  0xab   :  { %v1253_v34 = vpack.c.bf16 %v802_v31, %v801_v29  ;;  %v804_v42 = vld [vmem:[#allocation13 + $0x198] sm:$0xff]  ;;  %v805_v52 = vld [vmem:[#allocation13 + $0x1a0] sm:$0xff]  ;;  %v806_v53 = vld [vmem:[#allocation13 + $0x1a8] sm:$0xff] }
  0xac   :  { %v1257_v43 = vpack.c.bf16 %v804_v42, %v803_v41  ;;  %v757_v54 = vld [vmem:[#allocation13 + $0x20] sm:$0xff]  ;;  %v808_v2 = vld [vmem:[#allocation13 + $0x1b8] sm:$0xff]  ;;  %v759_v3 = vld [vmem:[#allocation13 + $0x30] sm:$0xff] }
  0xad   :  { %v763_v28 = vld [vmem:[#allocation13 + $0x50] sm:$0xff]  ;;  %v764_v29 = vld [vmem:[#allocation13 + $0x58] sm:$0xff]  ;;  %v765_v41 = vld [vmem:[#allocation13 + $0x60] sm:$0xff] }
  0xae   :  { %v766_v42 = vld [vmem:[#allocation13 + $0x68] sm:$0xff] }
 0x15b   :  { %v207_v55 = vpop.f32.mrb[0].mxu0 }
 0x15c   :  { %v280_v56 = vpop.f32.mrb[0].mxu1  ;;  %v1069_v58 = vpop.f32.mrb[1].mxu0 }
 0x15d   :  { %v281_v61 = vadd.f32 %v280_v56, %v207_v55  ;;  %v1080_v62 = vpop.f32.mrb[1].mxu1  ;;  %v1175_v55 = vpack.c.bf16 %v557_v46, %v553_v45  ;;  %v1207_v56 = vpack.c.bf16 %v559_v50, %v555_v49  ;;  %v565_v58 = vld [vmem:[#allocation11 + $0x160] sm:$0xff]  ;;  %v787_v45 = vld [vmem:[#allocation13 + $0x110] sm:$0xff]  ;;  %v774_v49 = vld [vmem:[#allocation13 + $0xa8] sm:$0xff] }
 0x15e   :  { %v567_v62 = vld [vmem:[#allocation11 + $0x170] sm:$0xff] }
 0x15f   :  { %v291_v6 = vadd.f32 %v978_v57, %v281_v61  ;;  %v561_v57 = vld [vmem:[#allocation11 + $0x140] sm:$0xff]  ;;  %v563_v61 = vld [vmem:[#allocation11 + $0x150] sm:$0xff] }
 0x160   :  { %v1179_v4 = vpack.c.bf16 %v565_v58, %v561_v57  ;;  %v1211_v5 = vpack.c.bf16 %v567_v62, %v563_v61  ;;  %v789_v57 = vld [vmem:[#allocation13 + $0x120] sm:$0xff]  ;;  %v790_v58 = vld [vmem:[#allocation13 + $0x128] sm:$0xff]  ;;  %v776_v61 = vld [vmem:[#allocation13 + $0xb8] sm:$0xff] }
 0x161   :  { %v1671_v11 = vmax.f32 %v291_v6, 0.0  ;;  %v569_v6 = vld [vmem:[#allocation11 + $0x180] sm:$0xff]  ;;  %v807_v62 = vld [vmem:[#allocation13 + $0x1b0] sm:$0xff] }
 0x163   :  { %444 = vmatmul.mubr.f32.vlgmr.msra.gmra.mrb[2].mxu0 %v1671_v11  ;;  %515 = vmatmul.mubr.f32.vlgmr.msra.gmra.mrb[2].mxu1 %v1671_v11 }
 0x164   :  { %1160 = vmatpush1.bf16.msra.mxu0 %v1159_v7  ;;  %1192 = vmatpush1.bf16.msra.mxu1 %v1191_v8  ;;  %v573_v7 = vld [vmem:[#allocation11 + $0x1a0] sm:$0xff]  ;;  %v1181_v8 = vpack.c.bf16 %v574_v0, %v570_v63  ;;  %v1263_v63 = vpack.c.bf16 %v790_v58, %v789_v57 }
 0x165   :  { %1162 = vmatprep.subr.bf16.mxu0 %v1161_v12  ;;  %1194 = vmatprep.subr.bf16.mxu1 %v1193_v13  ;;  %v575_v12 = vld [vmem:[#allocation11 + $0x1b0] sm:$0xff]  ;;  %v578_v13 = vld [vmem:[#allocation11 + $0x1c8] sm:$0xff]  ;;  %v1183_v17 = vpack.c.bf16 %v573_v7, %v569_v6  ;;  %v792_v7 = vld [vmem:[#allocation13 + $0x138] sm:$0xff] }
 0x166   :  { %671 = vmatprep.mubr.f32.mxu0 %v1499_v1  ;;  %742 = vmatprep.mubr.f32.mxu1 %v1499_v1  ;;  %v1203_v1 = vpack.c.bf16 %v551_v39, %v547_v38  ;;  %v1215_v18 = vpack.c.bf16 %v575_v12, %v571_v10  ;;  %v771_v38 = vld [vmem:[#allocation13 + $0x90] sm:$0xff]  ;;  %v809_v10 = vld [vmem:[#allocation13 + $0x1c0] sm:$0xff]  ;;  %v810_v12 = vld [vmem:[#allocation13 + $0x1c8] sm:$0xff] }
 0x167   :  { %v791_v6 = vld [vmem:[#allocation13 + $0x130] sm:$0xff] }
 0x168   :  { %1164 = vmatpush1.bf16.msra.mxu0 %v1163_v20  ;;  %1196 = vmatpush1.bf16.msra.mxu1 %v1195_v21  ;;  %v1185_v20 = vpack.c.bf16 %v582_v14, %v578_v13  ;;  %v1217_v21 = vpack.c.bf16 %v584_v16, %v580_v15  ;;  %v1267_v14 = vpack.c.bf16 %v792_v7, %v791_v6  ;;  %v761_v16 = vld [vmem:[#allocation13 + $0x40] sm:$0xff] }
 0x169   :  { %1166 = vmatprep.subr.bf16.mxu0 %v1165_v24  ;;  %1198 = vmatprep.subr.bf16.mxu1 %v1197_v25  ;;  %v583_v24 = vld [vmem:[#allocation11 + $0x1f0] sm:$0xff]  ;;  %v1187_v25 = vpack.c.bf16 %v581_v22, %v577_v19  ;;  %v1269_v19 = vpack.c.bf16 %v810_v12, %v809_v10  ;;  %v780_v22 = vld [vmem:[#allocation13 + $0xd8] sm:$0xff] }
 0x16a   :  { %v1219_v26 = vpack.c.bf16 %v583_v24, %v579_v23  ;;  %v811_v23 = vld [vmem:[#allocation13 + $0x1d0] sm:$0xff]  ;;  %v812_v24 = vld [vmem:[#allocation13 + $0x1d8] sm:$0xff] }
 0x16b   :  { %v1273_v31 = vpack.c.bf16 %v812_v24, %v811_v23 }
 0x16c   :  { %1168 = vmatpush1.bf16.msra.mxu0 %v1167_v32  ;;  %1200 = vmatpush1.bf16.msra.mxu1 %v1199_v33  ;;  %v753_v32 = vld [vmem:[#allocation13] sm:$0xff]  ;;  %v754_v33 = vld [vmem:[#allocation13 + $0x8] sm:$0xff] }
 0x16d   :  { %1170 = vmatprep.subr.bf16.mxu0 %v1169_v36  ;;  %1202 = vmatprep.subr.bf16.mxu1 %v1201_v37  ;;  %v1223_v35 = vpack.c.bf16 %v754_v33, %v753_v32  ;;  %v785_v36 = vld [vmem:[#allocation13 + $0x100] sm:$0xff]  ;;  %v786_v37 = vld [vmem:[#allocation13 + $0x108] sm:$0xff]  ;;  %v796_v32 = vld [vmem:[#allocation13 + $0x158] sm:$0xff] }
 0x16e   :  { %v1255_v39 = vpack.c.bf16 %v786_v37, %v785_v36  ;;  %v781_v33 = vld [vmem:[#allocation13 + $0xe0] sm:$0xff]  ;;  %v814_v36 = vld [vmem:[#allocation13 + $0x1e8] sm:$0xff]  ;;  %v1243_v37 = vpack.c.bf16 %v764_v29, %v763_v28 }
 0x170   :  { %1172 = vmatpush1.bf16.msra.mxu0 %v1171_v44  ;;  %1204 = vmatpush1.bf16.msra.mxu1 %v1203_v1  ;;  %v755_v44 = vld [vmem:[#allocation13 + $0x10] sm:$0xff]  ;;  %v756_v1 = vld [vmem:[#allocation13 + $0x18] sm:$0xff] }
 0x171   :  { %1174 = vmatprep.subr.bf16.mxu0 %v1173_v47  ;;  %1206 = vmatprep.subr.bf16.mxu1 %v1205_v48  ;;  %v1227_v46 = vpack.c.bf16 %v756_v1, %v755_v44  ;;  %v788_v47 = vld [vmem:[#allocation13 + $0x118] sm:$0xff]  ;;  %v773_v48 = vld [vmem:[#allocation13 + $0xa0] sm:$0xff]  ;;  %v798_v44 = vld [vmem:[#allocation13 + $0x168] sm:$0xff] }
 0x172   :  { %v1259_v50 = vpack.c.bf16 %v788_v47, %v787_v45  ;;  %v1229_v51 = vpack.c.bf16 %v774_v49, %v773_v48  ;;  %v783_v45 = vld [vmem:[#allocation13 + $0xf0] sm:$0xff]  ;;  %v816_v49 = vld [vmem:[#allocation13 + $0x1f8] sm:$0xff] }
 0x173   :  { %v815_v47 = vld [vmem:[#allocation13 + $0x1f0] sm:$0xff] }
 0x174   :  { %1176 = vmatpush1.bf16.msra.mxu0 %v1175_v55  ;;  %1208 = vmatpush1.bf16.msra.mxu1 %v1207_v56  ;;  %v1261_v55 = vpack.c.bf16 %v806_v53, %v805_v52  ;;  %v758_v56 = vld [vmem:[#allocation13 + $0x28] sm:$0xff]  ;;  %v1281_v52 = vpack.c.bf16 %v816_v49, %v815_v47 }
 0x175   :  { %1178 = vmatprep.subr.bf16.mxu0 %v1177_v59  ;;  %1210 = vmatprep.subr.bf16.mxu1 %v1209_v60  ;;  %v1231_v59 = vpack.c.bf16 %v758_v56, %v757_v54  ;;  %v775_v60 = vld [vmem:[#allocation13 + $0xb0] sm:$0xff] }
 0x176   :  { %v1233_v0 = vpack.c.bf16 %v776_v61, %v775_v60  ;;  %v799_v54 = vld [vmem:[#allocation13 + $0x170] sm:$0xff]  ;;  %v359_v61 = vlaneseq }
 0x178   :  { %1180 = vmatpush1.bf16.msra.mxu0 %v1179_v4  ;;  %1212 = vmatpush1.bf16.msra.mxu1 %v1211_v5  ;;  %v760_v4 = vld [vmem:[#allocation13 + $0x38] sm:$0xff]  ;;  %v1265_v5 = vpack.c.bf16 %v808_v2, %v807_v62  ;;  %v360_v62 = vshrl.u32 %v359_v61, 7  ;;  %v357_v2 = vld [vmem:[%s1703_s6] sm:$0xf]  ;;  %s1500_s6 = smov [#allocation14]  }
 0x179   :  { %1182 = vmatprep.subr.bf16.mxu0 %v1181_v8  ;;  %1214 = vmatprep.subr.bf16.mxu1 %v1213_v9  ;;  %v777_v8 = vld [vmem:[#allocation13 + $0xc0] sm:$0xff]  ;;  %v778_v9 = vld [vmem:[#allocation13 + $0xc8] sm:$0xff]  ;;  %v1235_v13 = vpack.c.bf16 %v760_v4, %v759_v3 }
 0x17a   :  { %v1237_v15 = vpack.c.bf16 %v778_v9, %v777_v8  ;;  %v365_v3 = vsub.s32 1, %v360_v62  ;;  %v373_v4 = vsub.s32 3, %v360_v62 }
 0x17c   :  { %1184 = vmatpush1.bf16.msra.mxu0 %v1183_v17  ;;  %1216 = vmatpush1.bf16.msra.mxu1 %v1215_v18  ;;  %v762_v17 = vld [vmem:[#allocation13 + $0x48] sm:$0xff]  ;;  %v793_v18 = vld [vmem:[#allocation13 + $0x140] sm:$0xff]  ;;  %v366_v10 = vrot.slane %v357_v2, %v365_v3  ;;  %v374_v12 = vrot.slane %v357_v2, %v373_v4 }
 0x17d   :  { %1186 = vmatprep.subr.bf16.mxu0 %v1185_v20  ;;  %1218 = vmatprep.subr.bf16.mxu1 %v1217_v21  ;;  %v794_v20 = vld [vmem:[#allocation13 + $0x148] sm:$0xff]  ;;  %v779_v21 = vld [vmem:[#allocation13 + $0xd0] sm:$0xff] }
 0x17e   :  { %v1241_v27 = vpack.c.bf16 %v780_v22, %v779_v21 }
 0x180   :  { %1188 = vmatpush1.bf16.msra.mxu0 %v1187_v25  ;;  %1220 = vmatpush1.bf16.msra.mxu1 %v1219_v26  ;;  %v1239_v25 = vpack.c.bf16 %v762_v17, %v761_v16  ;;  %v1271_v26 = vpack.c.bf16 %v794_v20, %v793_v18 }
 0x181   :  { %1222 = vmatprep.subr.bf16.mxu0 %v1221_v30  ;;  %1254 = vmatprep.subr.bf16.mxu1 %v1253_v34  ;;  %v795_v30 = vld [vmem:[#allocation13 + $0x150] sm:$0xff]  ;;  %v782_v34 = vld [vmem:[#allocation13 + $0xe8] sm:$0xff] }
 0x183   :  { %672 = vmatmul.mubr.f32.vlgmr.msra.gmra.mrb[4].mxu0 %v1671_v11  ;;  %743 = vmatmul.mubr.f32.vlgmr.msra.gmra.mrb[4].mxu1 %v1671_v11  ;;  %v1225_v11 = vpack.c.bf16 %v772_v40, %v771_v38  ;;  %v1275_v38 = vpack.c.bf16 %v796_v32, %v795_v30 }
 0x184   :  { %1224 = vmatpush3.bf16.msra.mxu0 %v1223_v35  ;;  %1256 = vmatpush3.bf16.msra.mxu1 %v1255_v39  ;;  %v813_v35 = vld [vmem:[#allocation13 + $0x1e0] sm:$0xff]  ;;  %v1245_v39 = vpack.c.bf16 %v782_v34, %v781_v33 }
 0x185   :  { %1226 = vmatprep.subr.bf16.mxu0 %v1225_v11  ;;  %1258 = vmatprep.subr.bf16.mxu1 %v1257_v43  ;;  %v1277_v40 = vpack.c.bf16 %v814_v36, %v813_v35  ;;  %v797_v11 = vld [vmem:[#allocation13 + $0x160] sm:$0xff]  ;;  %v1247_v43 = vpack.c.bf16 %v766_v42, %v765_v41 }
 0x186   :  { %v1279_v1 = vpack.c.bf16 %v798_v44, %v797_v11 }
 0x188   :  { %1228 = vmatpush3.bf16.msra.mxu0 %v1227_v46  ;;  %1260 = vmatpush3.bf16.msra.mxu1 %v1259_v50  ;;  %v784_v46 = vld [vmem:[#allocation13 + $0xf8] sm:$0xff]  ;;  %v767_v50 = vld [vmem:[#allocation13 + $0x70] sm:$0xff] }
 0x189   :  { %1230 = vmatprep.subr.bf16.mxu0 %v1229_v51  ;;  %1262 = vmatprep.subr.bf16.mxu1 %v1261_v55  ;;  %v1249_v48 = vpack.c.bf16 %v784_v46, %v783_v45  ;;  %v768_v51 = vld [vmem:[#allocation13 + $0x78] sm:$0xff] }
 0x18a   :  { %v1251_v53 = vpack.c.bf16 %v768_v51, %v767_v50  ;;  %v800_v55 = vld [vmem:[#allocation13 + $0x178] sm:$0xff] }
 0x18b   :  { %v1283_v56 = vpack.c.bf16 %v800_v55, %v799_v54 }
 0x18c   :  { %1232 = vmatpush3.bf16.msra.mxu0 %v1231_v59  ;;  %1264 = vmatpush3.bf16.msra.mxu1 %v1263_v63  ;;  %v361_v63 = vsub.s32 0, %v360_v62 }
 0x18d   :  { %1234 = vmatprep.subr.bf16.mxu0 %v1233_v0  ;;  %1266 = vmatprep.subr.bf16.mxu1 %v1265_v5  ;;  %v369_v0 = vsub.s32 2, %v360_v62  ;;  %v585_v5 = vld [vmem:[%s1705_s8] sm:$0xf]  ;;  %s964_s8 = sshll.u32 %s1500_s6, 4  ;;  %s965_s8 = int_to_ptr.vmem [resolvable:$true] %s964_s8 }
 0x18e   :  { %v362_v6 = vrot.slane %v357_v2, %v361_v63  ;;  %v590_v8 = vrot.slane %v585_v5, %v361_v63  ;;  %s1454_s18 = scalar_lea.vmem %s965_s8, 128  ;;  %p1459_p1 = scmp.lt.s32.totalorder %s965_s8, %s965_s8 }
 0x18f   :  { %v370_v7 = vrot.slane %v357_v2, %v369_v0  ;;  %v598_v9 = vrot.slane %v585_v5, %v369_v0  ;;  %p1455_p0 = scmp.ne.s32.totalorder %s965_s8, %s1454_s18  ;;  %p1460_p2 = scmp.lt.s32.totalorder %s1454_s18, %s1454_s18 }
 0x190   :  { %1236 = vmatpush3.bf16.msra.mxu0 %v1235_v13  ;;  %1268 = vmatpush3.bf16.msra.mxu1 %v1267_v14  ;;  %v594_v13 = vrot.slane %v585_v5, %v365_v3  ;;  %v602_v14 = vrot.slane %v585_v5, %v373_v4 }
 0x191   :  { %1238 = vmatprep.subr.bf16.mxu0 %v1237_v15  ;;  %1270 = vmatprep.subr.bf16.mxu1 %v1269_v19  ;;  %p1461_p3 = por %p1460_p2, %p1459_p1 }
 0x193   :  { %p1462_p4 = pnand %p1461_p3, %p1455_p0 }
 0x194   :  { %1240 = vmatpush3.bf16.msra.mxu0 %v1239_v25  ;;  %1272 = vmatpush3.bf16.msra.mxu1 %v1271_v26 }
 0x195   :  { %1242 = vmatprep.subr.bf16.mxu0 %v1241_v27  ;;  %1274 = vmatprep.subr.bf16.mxu1 %v1273_v31 }
 0x198   :  { %1244 = vmatpush3.bf16.msra.mxu0 %v1243_v37  ;;  %1276 = vmatpush3.bf16.msra.mxu1 %v1275_v38 }
 0x199   :  { %1246 = vmatprep.subr.bf16.mxu0 %v1245_v39  ;;  %1278 = vmatprep.subr.bf16.mxu1 %v1277_v40 }
 0x19c   :  { %1248 = vmatpush3.bf16.msra.mxu0 %v1247_v43  ;;  %1280 = vmatpush3.bf16.msra.mxu1 %v1279_v1 }
 0x19d   :  { %1250 = vmatprep.subr.bf16.mxu0 %v1249_v48  ;;  %1282 = vmatprep.subr.bf16.mxu1 %v1281_v52 }
 0x1a0   :  { %1252 = vmatpush3.bf16.msra.mxu0 %v1251_v53  ;;  %1284 = vmatpush3.bf16.msra.mxu1 %v1283_v56 }
 0x236   :  { %v445_v57 = vpop.f32.mrb[2].mxu0  ;;  %v516_v58 = vpop.f32.mrb[2].mxu1 }
 0x237   :  { %v447_v59 = vpop.f32.mrb[3].mxu0  ;;  %v518_v60 = vpop.f32.mrb[3].mxu1  ;;  %v446_v17 = vadd.f32 %v445_v57, %v362_v6  ;;  %v517_v18 = vadd.f32 %v516_v58, %v370_v7 }
 0x238   :  { %v448_v23 = vadd.f32 %v447_v59, %v366_v10  ;;  %v519_v24 = vadd.f32 %v518_v60, %v374_v12 }
 0x256   :  { %v673_v15 = vpop.f32.mrb[4].mxu0  ;;  %v744_v16 = vpop.f32.mrb[4].mxu1 }
 0x257   :  { %v674_v19 = vadd.f32 %v673_v15, %v590_v8  ;;  %v745_v20 = vadd.f32 %v744_v16, %v598_v9  ;;  %v675_v21 = vpop.f32.mrb[5].mxu0  ;;  %v746_v22 = vpop.f32.mrb[5].mxu1 }
 0x258   :  { %v676_v25 = vadd.f32 %v675_v21, %v594_v13  ;;  %v747_v26 = vadd.f32 %v746_v22, %v602_v14 }
 0x259   :  { %v749_v27 = vmul.f32 %v674_v19, %v446_v17  ;;  %v751_v28 = vmul.f32 %v745_v20, %v517_v18 }
 0x25a   :  { %v750_v29 = vmul.f32 %v676_v25, %v448_v23  ;;  %v752_v30 = vmul.f32 %v747_v26, %v519_v24 }
 0x25c   :  { %881 = vmatprep.mubr.f32.mxu0 %v750_v29  ;;  %951 = vmatprep.mubr.f32.mxu1 %v752_v30 }
 0x25d   :  { %882 = vmatmul.mubr.f32.vlgmr.msra.gmra.mrb[6].mxu0 %v749_v27  ;;  %952 = vmatmul.mubr.f32.vlgmr.msra.gmra.mrb[6].mxu1 %v751_v28 }
 0x330   :  { %v1021_v31 = vpop.f32.mrb[6].mxu0  ;;  %v1056_v32 = vpop.f32.mrb[6].mxu1 }
 0x331   :  { %v1022_v33 = vpop.f32.mrb[7].mxu0  ;;  %v1057_v34 = vpop.f32.mrb[7].mxu1 }
 0x332   :  { %v1023_v35 = vadd.f32 %v1022_v33, %v1021_v31  ;;  %v1058_v36 = vadd.f32 %v1057_v34, %v1056_v32 }
 0x334   :  { %v954_v37 = vadd.f32 %v1058_v36, %v1023_v35 }
 0x336   :  { %957 = vst [vmem:[#allocation14] sm:$0xff] %v954_v37 }
 0x337   :  { %1465 = shalt.err (!%p1462_p4)
}
 0x338   :  { %s1466_s23 = scalar_lea.hbm %s1707_s10, 128 }
 0x339   :  { %p1467_p5 = scmp.ne.s32.totalorder %s1707_s10, %s1466_s23  ;;  %p1470_p6 = scmp.lt.u32.totalorder %s1466_s23, %s1707_s10 }
 0x33b   :  { %p1472_p7 = pnand %p1470_p6, %p1467_p5 }
 0x33d   :  { %1475 = shalt.err (!%p1472_p7)
}
 0x33e   :  { %967 = dma.vmem_to_hbm [thread:$0]  %s965_s8, 128, %s1707_s10, [#allocation4]  }
 0x33f   :  { %1484 = dma.done.wait [#allocation4], 128  }
 0x340   :  { %1485 = vsyncadd [#allocation4], 4294967168 }
 0x341   :  { %971 = vsyncpa [#allocation3], 1 }
 0x342   :  { %972 = vsyncpa [#allocation6], 1 }
 0x343   :  { %973 = vsyncpa [#allocation9], 1 }
 0x344   :  { %974 = vsyncpa [#allocation12], 1 }
 0x345   :  { %975 = vsyncpa [#allocation4], 1 }

</bundles_post_ra>
